<compile_context>
chip_gen: v6e
topology: v6e:2x2x1
jax: 0.10.0
libtpu: 0.0.40
codegen_flags: <defaults>
</compile_context>

<pallas_src>
import functools

import jax
import jax.numpy as jnp
from jax.experimental import pallas as pl
from jax.experimental.pallas import tpu as pltpu

_LANES = 128
_TARGET_BLOCK_BYTES = 2 * 1024 * 1024  # ~2 MiB per input block


def _min_sublanes(dtype):
    # Minimum second-to-last tile dim: 8 (32-bit), 16 (16-bit), 32 (8-bit).
    itemsize = jnp.dtype(dtype).itemsize
    return max(8, 32 // max(itemsize, 1))


def _round_up(a, b):
    return -(-a // b) * b


def _swish_kernel(x_ref, o_ref, *, compute_dtype):
    x = x_ref[...].astype(compute_dtype)
    # sigmoid -> EUP (exp + reciprocal), multiply -> VPU; all hidden under DMA.
    o_ref[...] = (x * jax.nn.sigmoid(x)).astype(o_ref.dtype)


@functools.partial(jax.jit, static_argnames=("block_bytes",))
def swish_forward(x, *, block_bytes=_TARGET_BLOCK_BYTES):
    """Swish.forward: x * sigmoid(x), any input shape/dtype."""
    orig_shape = x.shape
    n = x.size
    if n == 0:
        return x

    dtype = x.dtype
    itemsize = jnp.dtype(dtype).itemsize
    min_sub = _min_sublanes(dtype)

    if jnp.dtype(dtype) in (jnp.dtype(jnp.float32), jnp.dtype(jnp.bfloat16)):
        compute_dtype = dtype
    else:
        compute_dtype = jnp.float32

    # Lane-dense layout: flatten to (rows, 128). Pad only up to the next
    # 128-lane boundary (at most 127 elements); zero is safe: swish(0) == 0.
    rows = -(-n // _LANES)
    padded_n = rows * _LANES
    x_flat = x.reshape(-1)
    if padded_n != n:
        x_flat = jnp.pad(x_flat, (0, padded_n - n))
    x2 = x_flat.reshape(rows, _LANES)

    # Row tile targeting ~2 MiB blocks (4096 f32 / 8192 bf16 / 16384 int8).
    tm = max(min_sub,
             (block_bytes // (_LANES * itemsize) // min_sub) * min_sub)

    if rows >= tm:
        tm_eff = tm
    elif rows >= 2 * min_sub:
        # Medium input: keep >= 2 grid steps so both v7x TCs get work.
        tm_eff = _round_up(-(-rows // 2), min_sub)
    else:
        # Tiny input: single block equal to the full array (always legal).
        tm_eff = rows

    grid = (pl.cdiv(rows, tm_eff),)

    out2 = pl.pallas_call(
        functools.partial(_swish_kernel, compute_dtype=compute_dtype),
        out_shape=jax.ShapeDtypeStruct((rows, _LANES), dtype),
        grid_spec=pltpu.PrefetchScalarGridSpec(
            num_scalar_prefetch=0,
            grid=grid,
            in_specs=[pl.BlockSpec((tm_eff, _LANES), lambda i: (i, 0))],
            out_specs=pl.BlockSpec((tm_eff, _LANES), lambda i: (i, 0)),
        ),
        compiler_params=pltpu.CompilerParams(
            dimension_semantics=("parallel",),
        ),
    )(x2)

    if padded_n != n:
        return out2.reshape(-1)[:n].reshape(orig_shape)
    return out2.reshape(orig_shape)


def swish_reference(x):
    return x * jax.nn.sigmoid(x)


if __name__ == "__main__":
    key = jax.random.PRNGKey(0)
    k1, k2, k3 = jax.random.split(key, 3)

    # Small deterministic inputs consistent with the module (elementwise on
    # arbitrary-shaped activations).
    x1 = jax.random.normal(k1, (2, 4, 16, 16), dtype=jnp.float32)   # aligned
    x2 = jax.random.normal(k2, (3, 7, 5), dtype=jnp.float32)        # ragged tail
    x3 = jax.random.normal(k3, (2, 8, 32), dtype=jnp.bfloat16)      # bf16 path

    out1 = jax.block_until_ready(swish_forward(x1))
    out2 = jax.block_until_ready(swish_forward(x2))
    out3 = jax.block_until_ready(swish_forward(x3))

    ref1 = swish_reference(x1)
    ref2 = swish_reference(x2)
    ref3 = swish_reference(x3.astype(jnp.float32)).astype(jnp.bfloat16)

    assert out1.shape == x1.shape and out2.shape == x2.shape and out3.shape == x3.shape
    assert jnp.allclose(out1, ref1, atol=1e-6, rtol=1e-6), "mismatch (aligned)"
    assert jnp.allclose(out2, ref2, atol=1e-6, rtol=1e-6), "mismatch (ragged)"
    assert jnp.allclose(out3.astype(jnp.float32), ref3.astype(jnp.float32),
                        atol=2e-2, rtol=2e-2), "mismatch (bf16)"

    print("KERNEL_OK")
</pallas_src>

<mosaic_0001>
module attributes {stable_mosaic.version = 11 : i64} {
  func.func @_swish_kernel(%arg0: i32, %arg1: memref<8x128xf32, #tpu.memory_space<vmem>>, %arg2: memref<8x128xf32, #tpu.memory_space<vmem>>) attributes {dimension_semantics = [#tpu.dimension_semantics<parallel>], iteration_bounds = array<i64: 2>, scalar_prefetch = 0 : i64, scratch_operands = 0 : i64, tpu.core_type = #tpu.core_type<tc>, window_params = [{transform_indices = @transform_0, window_bounds = array<i64: 8, 128>}, {transform_indices = @transform_1, window_bounds = array<i64: 8, 128>}]} {
    %c0 = arith.constant 0 : index
    %c0_0 = arith.constant 0 : index
    %0 = vector.load %arg1[%c0, %c0_0] : memref<8x128xf32, #tpu.memory_space<vmem>>, vector<8x128xf32>
    %1 = arith.negf %0 : vector<8x128xf32>
    %2 = math.exp %1 : vector<8x128xf32>
    %cst = arith.constant 1.000000e+00 : f32
    %3 = vector.broadcast %cst : f32 to vector<8x128xf32>
    %4 = arith.addf %3, %2 : vector<8x128xf32>
    %5 = arith.divf %3, %4 : vector<8x128xf32>
    %6 = arith.mulf %0, %5 : vector<8x128xf32>
    %c0_1 = arith.constant 0 : index
    %c0_2 = arith.constant 0 : index
    %7 = vector.load %arg2[%c0_1, %c0_2] : memref<8x128xf32, #tpu.memory_space<vmem>>, vector<8x128xf32>
    tpu.vector_store %arg2[%c0_1, %c0_2], %6 {strides = array<i32>} : memref<8x128xf32, #tpu.memory_space<vmem>>, vector<8x128xf32>,
    return
  }
  func.func @transform_0(%arg0: i32) -> (i32, i32) {
    %c0_i32 = arith.constant 0 : i32
    %c0_i32_0 = arith.constant 0 : i32
    return %arg0, %c0_i32 : i32, i32
  }
  func.func @transform_1(%arg0: i32) -> (i32, i32) {
    %c0_i32 = arith.constant 0 : i32
    %c0_i32_0 = arith.constant 0 : i32
    return %arg0, %c0_i32 : i32, i32
  }
}

</mosaic_0001>

<bundles_post_ra>
// kernel: swish_forward.1
= control target key start
LH: loop header
LB: loop body
LE: loop exit
PB: predicated region body
PF: predicated region fallthrough
CT: control target
= control target key end

     0   :  { %s200_s6 = smov 0   ;;  %s220_s0 = inlined_call_operand.vmem [shape: f32[16,128], index: 0, kind: input, shape index: {}]   ;;  %s221_s1 = inlined_call_operand.vmem [shape: f32[16,128], index: 1, kind: output, shape index: {}]  }
   0x1 LB: > { %s174_s7 = sadd.s32 4294967295, %s202_s6   ;;  %p178_p0 = scmp.ge.s32.totalorder %s202_s6, 1  ;;  %s202_s6 = sphi %s200_s6, %s11_s6  }
   0x2   : > { %p86_p1 = scmp.lt.s32.totalorder %s202_s6, 3 }
   0x4   : > { %p87_p2 = pnand %p178_p0, %p86_p1 }
   0x5   : > { %p104_p3 = scmp.lt.s32.totalorder (!%p87_p2), %s174_s7, 1 }
   0x6   : > { %90 = sbr.rel (%p87_p2) target bundleno = 50 (0x32), region = 24 }
   0xb   : > { %s223_s7 = smov (!%p104_p3, %s174_s7), 1 }
   0xc   : > { %s179_s8 = sshll.u32 %s223_s7, 3 }
   0xd   : > { %s107_s11 = scalar_lea.vmem %s220_s0, %s179_s8  ;;  %s111_s14 = scalar_lea.vmem %s221_s1, %s179_s8 }
   0xe   : > { %v112_v0 = vld [vmem:[%s107_s11] sm:$0xff] }
   0xf   : > { %v181_v1 = vmul.f32 -1.442695, %v112_v0 }
  0x11   : > { %192 = vpow2.f32 %v181_v1 }
  0x1e   : > { %v193_v2 = vpop.eup %192 }
  0x1f   : > { %v116_v3 = vadd.f32 1.0, %v193_v2 }
  0x21   : > { %194 = vrcp.f32 %v116_v3 }
  0x2e   : > { %v195_v4 = vpop.eup %194 }
  0x2f   : > { %v119_v5 = vmul.f32 %v195_v4, %v112_v0 }
  0x31   : > { %120 = vst [vmem:[%s111_s14] sm:$0xff] %v119_v5 }
  0x32 PF: > { %s11_s6 = sadd.s32 1, %s202_s6  }
  0x33   : > { %p8_p4 = scmp.ge.s32.totalorder %s11_s6, 4  }
  0x35   :  { %10 = sbr.rel (!%p8_p4) target bundleno = 1 (0x1), region = 54 }

</bundles_post_ra>
